<compile_context>
chip_gen: v7x
topology: tpu7x:2x2x1
jax: 0.10.0
libtpu: 0.0.40
codegen_flags: <defaults>
</compile_context>

<pallas_src>
import functools

import jax
import jax.numpy as jnp
from jax.experimental import pallas as pl
from jax.experimental.pallas import tpu as pltpu


_NEG_BIG = -1e30   # bias of padded action columns -> logit ~ -inf -> prob 0
_LANE = 128
_MAX_TILE = 2048   # row-tile cap; ~7 MiB working set in f32, well under VMEM


def _actor_kernel(x_ref, w1_ref, b1_ref, w2_ref, b2_ref, w3_ref, b3_ref,
                  probs_ref):
    """Fused actor MLP: 3 matmuls (MXU, f32 acc) + ReLU + stable softmax."""
    wdt = w1_ref.dtype                          # f32 by default (bf16 optional)
    x = x_ref[...].astype(wdt)                                      # (bB, D)
    h1 = jnp.dot(x, w1_ref[...], preferred_element_type=jnp.float32)
    h1 = jnp.maximum(h1 + b1_ref[...], 0.0)                         # (bB, fc1)
    h2 = jnp.dot(h1.astype(wdt), w2_ref[...],
                 preferred_element_type=jnp.float32)
    h2 = jnp.maximum(h2 + b2_ref[...], 0.0)                         # (bB, fc2)
    logits = jnp.dot(h2.astype(wdt), w3_ref[...],
                     preferred_element_type=jnp.float32)
    logits = logits + b3_ref[...]          # padded cols carry a -1e30 bias
    # Numerically-stable softmax over the lane-dense (padded) action axis.
    m = jnp.max(logits, axis=-1, keepdims=True)
    e = jnp.exp(logits - m)
    denom = jnp.sum(e, axis=-1, keepdims=True)
    # Exact reciprocal: EUP/VALU have huge slack here, and approx=True would
    # leave a ~2^-12 systematic error in the probability normalization.
    probs_ref[...] = e * pl.reciprocal(denom, approx=False)


def prepare_actor_params(w1, b1, w2, b2, w3, b3, param_dtype=jnp.float32):
    """One-time prep: cast + pad action dim to 128 lanes.  Call OUTSIDE the
    rollout hot loop; the padded/cast arrays are what ppo_actor_forward takes.

    NOTE: the -1e30 padded bias is only sound because the padded w3 columns
    are exactly zero (so the padded logit is exactly -1e30 regardless of the
    activations).  Keep these two paddings consistent.
    """
    fc2, A = w3.shape
    A_pad = pl.cdiv(A, _LANE) * _LANE
    w1c = jnp.asarray(w1, param_dtype)
    w2c = jnp.asarray(w2, param_dtype)
    b1c = jnp.asarray(b1, jnp.float32).reshape(1, -1)
    b2c = jnp.asarray(b2, jnp.float32).reshape(1, -1)
    w3c = jnp.zeros((fc2, A_pad), param_dtype).at[:, :A].set(
        jnp.asarray(w3, param_dtype))
    b3c = jnp.full((1, A_pad), _NEG_BIG, jnp.float32).at[:, :A].set(
        jnp.asarray(b3, jnp.float32).reshape(-1))
    return w1c, b1c, w2c, b2c, w3c, b3c


def _pick_block_b(batch):
    """Row-tile policy (overhead-bound kernel -> as few grid steps as possible).

    <=1024 rows: one grid step (no per-step pipeline overhead; a 2nd step buys
    nothing on 1-TC v5e/v6e).  Larger: 2 balanced steps (v7x 2 TensorCores),
    tile capped at 2048 rows (still only ~7 MiB of VMEM working set).
    """
    b8 = ((batch + 7) // 8) * 8          # (8,128) sublane constraint
    if b8 <= 1024:
        return b8
    half = ((b8 + 15) // 16) * 8         # ceil(b8/2) rounded to a multiple of 8
    return min(half, _MAX_TILE)


@functools.partial(jax.jit, static_argnames=("n_actions", "block_b"))
def ppo_actor_forward(state, w1, b1, w2, b2, w3, b3, *, n_actions,
                      block_b=None):
    """Returns Categorical probabilities, shape (B, n_actions).

    Params must come from `prepare_actor_params` (pre-cast, action-padded).
    """
    B, D = state.shape
    fc1 = w1.shape[1]
    fc2 = w2.shape[1]
    A_pad = w3.shape[1]

    if block_b is None:
        block_b = _pick_block_b(B)
    B_pad = pl.cdiv(B, block_b) * block_b
    if B_pad != B:
        state = jnp.pad(state, ((0, B_pad - B), (0, 0)))

    grid = (B_pad // block_b,)
    # Weights/biases (~0.4 MiB f32) stay fully VMEM-resident across the grid;
    # only the batch axis is streamed.
    full = lambda shape: pl.BlockSpec(shape, lambda i: (0, 0))

    probs = pl.pallas_call(
        _actor_kernel,
        out_shape=jax.ShapeDtypeStruct((B_pad, A_pad), jnp.float32),
        grid_spec=pltpu.PrefetchScalarGridSpec(
            num_scalar_prefetch=0,
            grid=grid,
            in_specs=[
                pl.BlockSpec((block_b, D), lambda i: (i, 0)),   # state tile
                full((D, fc1)),
                full((1, fc1)),
                full((fc1, fc2)),
                full((1, fc2)),
                full((fc2, A_pad)),
                full((1, A_pad)),
            ],
            out_specs=pl.BlockSpec((block_b, A_pad), lambda i: (i, 0)),
        ),
        compiler_params=pltpu.CompilerParams(
            dimension_semantics=("parallel",)),
    )(state, w1, b1, w2, b2, w3, b3)

    return probs[:B, :n_actions]


def init_linear_params(key, fan_in, fan_out):
    # Deterministic init mirroring torch.nn.Linear default (U(+-1/sqrt(fan_in))).
    kw, kb = jax.random.split(key)
    bound = 1.0 / jnp.sqrt(jnp.float32(fan_in))
    w = jax.random.uniform(kw, (fan_in, fan_out), jnp.float32, -bound, bound)
    b = jax.random.uniform(kb, (fan_out,), jnp.float32, -bound, bound)
    return w, b


def _reference(state, w1, b1, w2, b2, w3, b3):
    h1 = jnp.maximum(state @ w1 + b1, 0.0)
    h2 = jnp.maximum(h1 @ w2 + b2, 0.0)
    return jax.nn.softmax(h2 @ w3 + b3, axis=-1)


if __name__ == "__main__":
    # Shapes consistent with the module: state dim 16, fc1=fc2=256, 6 actions.
    input_d, fc1, fc2, n_actions = 16, 256, 256, 6

    key = jax.random.PRNGKey(0)
    k_x1, k_x2, k1, k2, k3 = jax.random.split(key, 5)

    w1, b1 = init_linear_params(k1, input_d, fc1)
    w2, b2 = init_linear_params(k2, fc1, fc2)
    w3, b3 = init_linear_params(k3, fc2, n_actions)

    # One-time param prep (hoisted out of the per-step forward).
    params = jax.block_until_ready(
        prepare_actor_params(w1, b1, w2, b2, w3, b3))

    # Small single-row-group batch and a larger ragged batch (exercises batch
    # padding; both run in a single grid step).
    for bsz, kx in ((4, k_x1), (200, k_x2)):
        state = jax.random.normal(kx, (bsz, input_d), jnp.float32)
        probs = jax.block_until_ready(
            ppo_actor_forward(state, *params, n_actions=n_actions))
        ref = _reference(state, w1, b1, w2, b2, w3, b3)
        assert probs.shape == (bsz, n_actions)
        # f32 weights + exact reciprocal -> tight tolerance.
        assert jnp.allclose(probs, ref, atol=1e-5, rtol=1e-4), (
            "max abs err", float(jnp.max(jnp.abs(probs - ref))))
        assert jnp.allclose(jnp.sum(probs, axis=-1), 1.0, atol=1e-5)

    # TODO(synk): torch.distributions.Categorical (sampling / log_prob API),
    # the Adam optimizer and checkpoint I/O have no Pallas equivalent; the
    # kernel returns the Categorical's `probs` parameter.
    print("KERNEL_OK")
</pallas_src>

<mosaic_0001>
module attributes {stable_mosaic.version = 11 : i64} {
  func.func @_actor_kernel(%arg0: i32, %arg1: memref<8x16xf32, #tpu.memory_space<vmem>>, %arg2: memref<16x256xf32, #tpu.memory_space<vmem>>, %arg3: memref<1x256xf32, #tpu.memory_space<vmem>>, %arg4: memref<256x256xf32, #tpu.memory_space<vmem>>, %arg5: memref<1x256xf32, #tpu.memory_space<vmem>>, %arg6: memref<256x128xf32, #tpu.memory_space<vmem>>, %arg7: memref<1x128xf32, #tpu.memory_space<vmem>>, %arg8: memref<8x128xf32, #tpu.memory_space<vmem>>) attributes {dimension_semantics = [#tpu.dimension_semantics<parallel>], iteration_bounds = array<i64: 1>, scalar_prefetch = 0 : i64, scratch_operands = 0 : i64, tpu.core_type = #tpu.core_type<tc>, window_params = [{transform_indices = @transform_0, window_bounds = array<i64: 8, 16>}, {pipeline_mode = #tpu.pipeline_mode<synchronous>, transform_indices = @transform_1, window_bounds = array<i64: 16, 256>}, {pipeline_mode = #tpu.pipeline_mode<synchronous>, transform_indices = @transform_2, window_bounds = array<i64: 1, 256>}, {pipeline_mode = #tpu.pipeline_mode<synchronous>, transform_indices = @transform_3, window_bounds = array<i64: 256, 256>}, {pipeline_mode = #tpu.pipeline_mode<synchronous>, transform_indices = @transform_4, window_bounds = array<i64: 1, 256>}, {pipeline_mode = #tpu.pipeline_mode<synchronous>, transform_indices = @transform_5, window_bounds = array<i64: 256, 128>}, {pipeline_mode = #tpu.pipeline_mode<synchronous>, transform_indices = @transform_6, window_bounds = array<i64: 1, 128>}, {transform_indices = @transform_7, window_bounds = array<i64: 8, 128>}]} {
    %c0 = arith.constant 0 : index
    %c0_0 = arith.constant 0 : index
    %0 = vector.load %arg1[%c0, %c0_0] : memref<8x16xf32, #tpu.memory_space<vmem>>, vector<8x16xf32>
    %c0_1 = arith.constant 0 : index
    %c0_2 = arith.constant 0 : index
    %1 = vector.load %arg2[%c0_1, %c0_2] : memref<16x256xf32, #tpu.memory_space<vmem>>, vector<16x256xf32>
    %cst = arith.constant dense<0.000000e+00> : vector<8x256xf32>
    %2 = tpu.matmul %0, %1, %cst {dimension_numbers = #tpu.dot_dimension_numbers<[1], [0], [0], [1], [0, 0, 1, 1], [], []>} : vector<8x16xf32>, vector<16x256xf32>, vector<8x256xf32> -> vector<8x256xf32>
    %c0_3 = arith.constant 0 : index
    %c0_4 = arith.constant 0 : index
    %3 = vector.load %arg3[%c0_3, %c0_4] : memref<1x256xf32, #tpu.memory_space<vmem>>, vector<1x256xf32>
    %4 = vector.broadcast %3 : vector<1x256xf32> to vector<8x256xf32>
    %5 = arith.addf %2, %4 : vector<8x256xf32>
    %cst_5 = arith.constant 0.000000e+00 : f32
    %6 = vector.broadcast %cst_5 : f32 to vector<8x256xf32>
    %7 = arith.maximumf %5, %6 : vector<8x256xf32>
    %c0_6 = arith.constant 0 : index
    %c0_7 = arith.constant 0 : index
    %8 = vector.load %arg4[%c0_6, %c0_7] : memref<256x256xf32, #tpu.memory_space<vmem>>, vector<256x256xf32>
    %cst_8 = arith.constant dense<0.000000e+00> : vector<8x256xf32>
    %9 = tpu.matmul %7, %8, %cst_8 {dimension_numbers = #tpu.dot_dimension_numbers<[1], [0], [0], [1], [0, 0, 1, 1], [], []>} : vector<8x256xf32>, vector<256x256xf32>, vector<8x256xf32> -> vector<8x256xf32>
    %c0_9 = arith.constant 0 : index
    %c0_10 = arith.constant 0 : index
    %10 = vector.load %arg5[%c0_9, %c0_10] : memref<1x256xf32, #tpu.memory_space<vmem>>, vector<1x256xf32>
    %11 = vector.broadcast %10 : vector<1x256xf32> to vector<8x256xf32>
    %12 = arith.addf %9, %11 : vector<8x256xf32>
    %cst_11 = arith.constant 0.000000e+00 : f32
    %13 = vector.broadcast %cst_11 : f32 to vector<8x256xf32>
    %14 = arith.maximumf %12, %13 : vector<8x256xf32>
    %c0_12 = arith.constant 0 : index
    %c0_13 = arith.constant 0 : index
    %15 = vector.load %arg6[%c0_12, %c0_13] : memref<256x128xf32, #tpu.memory_space<vmem>>, vector<256x128xf32>
    %cst_14 = arith.constant dense<0.000000e+00> : vector<8x128xf32>
    %16 = tpu.matmul %14, %15, %cst_14 {dimension_numbers = #tpu.dot_dimension_numbers<[1], [0], [0], [1], [0, 0, 1, 1], [], []>} : vector<8x256xf32>, vector<256x128xf32>, vector<8x128xf32> -> vector<8x128xf32>
    %c0_15 = arith.constant 0 : index
    %c0_16 = arith.constant 0 : index
    %17 = vector.load %arg7[%c0_15, %c0_16] : memref<1x128xf32, #tpu.memory_space<vmem>>, vector<1x128xf32>
    %18 = vector.broadcast %17 : vector<1x128xf32> to vector<8x128xf32>
    %19 = arith.addf %16, %18 : vector<8x128xf32>
    %cst_17 = arith.constant dense<0xFF800000> : vector<8xf32>
    %20 = vector.multi_reduction <maximumf>, %19, %cst_17 [1] : vector<8x128xf32> to vector<8xf32>
    %21 = vector.shape_cast %20 : vector<8xf32> to vector<8x1xf32>
    %22 = vector.broadcast %21 : vector<8x1xf32> to vector<8x128xf32>
    %23 = arith.subf %19, %22 : vector<8x128xf32>
    %24 = math.exp %23 : vector<8x128xf32>
    %cst_18 = arith.constant dense<0.000000e+00> : vector<8xf32>
    %25 = vector.multi_reduction <add>, %24, %cst_18 [1] : vector<8x128xf32> to vector<8xf32>
    %26 = vector.shape_cast %25 : vector<8xf32> to vector<8x1xf32>
    %27 = tpu.reciprocal %26 : vector<8x1xf32> -> vector<8x1xf32>
    %28 = vector.broadcast %27 : vector<8x1xf32> to vector<8x128xf32>
    %29 = arith.mulf %24, %28 : vector<8x128xf32>
    %c0_19 = arith.constant 0 : index
    %c0_20 = arith.constant 0 : index
    %30 = vector.load %arg8[%c0_19, %c0_20] : memref<8x128xf32, #tpu.memory_space<vmem>>, vector<8x128xf32>
    tpu.vector_store %arg8[%c0_19, %c0_20], %29 {strides = array<i32>} : memref<8x128xf32, #tpu.memory_space<vmem>>, vector<8x128xf32>,
    return
  }
  func.func @transform_0(%arg0: i32) -> (i32, i32) {
    %c0_i32 = arith.constant 0 : i32
    %c0_i32_0 = arith.constant 0 : i32
    return %arg0, %c0_i32 : i32, i32
  }
  func.func @transform_1(%arg0: i32) -> (i32, i32) {
    %c0_i32 = arith.constant 0 : i32
    %c0_i32_0 = arith.constant 0 : i32
    %c0_i32_1 = arith.constant 0 : i32
    return %c0_i32, %c0_i32_0 : i32, i32
  }
  func.func @transform_2(%arg0: i32) -> (i32, i32) {
    %c0_i32 = arith.constant 0 : i32
    %c0_i32_0 = arith.constant 0 : i32
    %c0_i32_1 = arith.constant 0 : i32
    return %c0_i32, %c0_i32_0 : i32, i32
  }
  func.func @transform_3(%arg0: i32) -> (i32, i32) {
    %c0_i32 = arith.constant 0 : i32
    %c0_i32_0 = arith.constant 0 : i32
    %c0_i32_1 = arith.constant 0 : i32
    return %c0_i32, %c0_i32_0 : i32, i32
  }
  func.func @transform_4(%arg0: i32) -> (i32, i32) {
    %c0_i32 = arith.constant 0 : i32
    %c0_i32_0 = arith.constant 0 : i32
    %c0_i32_1 = arith.constant 0 : i32
    return %c0_i32, %c0_i32_0 : i32, i32
  }
  func.func @transform_5(%arg0: i32) -> (i32, i32) {
    %c0_i32 = arith.constant 0 : i32
    %c0_i32_0 = arith.constant 0 : i32
    %c0_i32_1 = arith.constant 0 : i32
    return %c0_i32, %c0_i32_0 : i32, i32
  }
  func.func @transform_6(%arg0: i32) -> (i32, i32) {
    %c0_i32 = arith.constant 0 : i32
    %c0_i32_0 = arith.constant 0 : i32
    %c0_i32_1 = arith.constant 0 : i32
    return %c0_i32, %c0_i32_0 : i32, i32
  }
  func.func @transform_7(%arg0: i32) -> (i32, i32) {
    %c0_i32 = arith.constant 0 : i32
    %c0_i32_0 = arith.constant 0 : i32
    return %arg0, %c0_i32 : i32, i32
  }
}

</mosaic_0001>

<bundles_post_ra>
// kernel: ppo_actor_forward.1
= control target key start
LH: loop header
LB: loop body
LE: loop exit
PB: predicated region body
PF: predicated region fallthrough
CT: control target
= control target key end

     0   :  { %12 = vsyncpa [#allocation3], 0  ;;  %s760_s0 = inlined_call_operand.vmem [shape: f32[8,16], index: 0, kind: input, shape index: {}]   ;;  %s761_s1 = inlined_call_operand.hbm [shape: f32[16,256], index: 1, kind: input, shape index: {}]   ;;  %s762_s2 = inlined_call_operand.vmem [shape: f32[1,256], index: 2, kind: input, shape index: {}]   ;;  %s763_s3 = inlined_call_operand.hbm [shape: f32[256,256], index: 3, kind: input, shape index: {}]   ;;  %s764_s4 = inlined_call_operand.vmem [shape: f32[1,256], index: 4, kind: input, shape index: {}]   ;;  %s765_s5 = inlined_call_operand.hbm [shape: f32[256,128], index: 5, kind: input, shape index: {}]   ;;  %s766_s6 = inlined_call_operand.vmem [shape: f32[1,128], index: 6, kind: input, shape index: {}]   ;;  %s767_s7 = inlined_call_operand.vmem [shape: f32[8,128], index: 7, kind: output, shape index: {}]  }
   0x1   :  { %13 = vsyncpa [#allocation5], 0  ;;  %s654_s24 = smov [#allocation4]   ;;  %s655_s26 = smov [#allocation2]  }
   0x2   :  { %s35_s25 = sshll.u32 %s654_s24, 4  ;;  %s21_s27 = sshll.u32 %s655_s26, 4  ;;  %s36_s25 = int_to_ptr.vmem [resolvable:$true] %s35_s25  ;;  %s702_s27 = int_to_ptr.vmem [resolvable:$true] %s21_s27 }
   0x3   :  { %s584_s30 = scalar_lea.hbm %s763_s3, 8192 }
   0x4   :  { %p585_p0 = scmp.ne.s32.totalorder %s763_s3, %s584_s30  ;;  %p588_p1 = scmp.lt.u32.totalorder %s584_s30, %s763_s3 }
   0x6   :  { %p590_p2 = pnand %p588_p1, %p585_p0 }
   0x8   :  { %593 = shalt.err (!%p590_p2)
}
   0x9   :  { %s594_s12 = scalar_lea.vmem %s36_s25, 8192  ;;  %p599_p4 = scmp.lt.s32.totalorder %s36_s25, %s36_s25 }
   0xa   :  { %p595_p3 = scmp.ne.s32.totalorder %s36_s25, %s594_s12  ;;  %p600_p5 = scmp.lt.s32.totalorder %s594_s12, %s594_s12 }
   0xc   :  { %p601_p6 = por %p600_p5, %p599_p4 }
   0xe   :  { %p602_p7 = pnand %p601_p6, %p595_p3 }
  0x10   :  { %605 = shalt.err (!%p602_p7)
}
  0x11   :  { %s656_s13 = smov 256   ;;  %s657_s14 = smov 16  }
  0x12   :  { %41 = dma.hbm_to_vmem [thread:$0]  %s763_s3, 8192, %s36_s25, [#allocation5], %s656_s13, %s656_s13, %s657_s14  }
  0x13   :  { %s606_s19 = scalar_lea.hbm %s761_s1, 512 }
  0x14   :  { %p607_p8 = scmp.ne.s32.totalorder %s761_s1, %s606_s19  ;;  %p610_p9 = scmp.lt.u32.totalorder %s606_s19, %s761_s1 }
  0x16   :  { %p612_p10 = pnand %p610_p9, %p607_p8 }
  0x18   :  { %615 = shalt.err (!%p612_p10)
}
  0x19   :  { %s616_s24 = scalar_lea.vmem %s702_s27, 512  ;;  %p621_p12 = scmp.lt.s32.totalorder %s702_s27, %s702_s27 }
  0x1a   :  { %p617_p11 = scmp.ne.s32.totalorder %s702_s27, %s616_s24  ;;  %p622_p13 = scmp.lt.s32.totalorder %s616_s24, %s616_s24 }
  0x1c   :  { %p623_p0 = por %p622_p13, %p621_p12 }
  0x1e   :  { %p624_p1 = pnand %p623_p0, %p617_p11 }
  0x20   :  { %627 = shalt.err (!%p624_p1)
}
  0x21   :  { %27 = dma.hbm_to_vmem [thread:$0]  %s761_s1, 512, %s702_s27, [#allocation3], %s656_s13, %s656_s13, %s657_s14  }
  0x22   :  { %s658_s26 = smov [#allocation6]   ;;  %s628_s8 = scalar_lea.hbm %s765_s5, 4096 }
  0x23   :  { %s49_s28 = sshll.u32 %s658_s26, 4  ;;  %p629_p2 = scmp.ne.s32.totalorder %s765_s5, %s628_s8  ;;  %s50_s28 = int_to_ptr.vmem [resolvable:$true] %s49_s28 }
  0x24   :  { %p632_p3 = scmp.lt.u32.totalorder %s628_s8, %s765_s5 }
  0x26   :  { %p634_p4 = pnand %p632_p3, %p629_p2 }
  0x28   :  { %637 = shalt.err (!%p634_p4)
}
  0x29   :  { %s638_s15 = scalar_lea.vmem %s50_s28, 4096  ;;  %p643_p6 = scmp.lt.s32.totalorder %s50_s28, %s50_s28 }
  0x2a   :  { %p639_p5 = scmp.ne.s32.totalorder %s50_s28, %s638_s15  ;;  %p644_p7 = scmp.lt.s32.totalorder %s638_s15, %s638_s15 }
  0x2c   :  { %p645_p8 = por %p644_p7, %p643_p6 }
  0x2e   :  { %p646_p9 = pnand %p645_p8, %p639_p5 }
  0x30   :  { %649 = shalt.err (!%p646_p9)
}
  0x31   :  { %s659_s1 = smov 128   ;;  %s660_s27 = smov 8  }
  0x32   :  { %55 = dma.hbm_to_vmem [thread:$0]  %s765_s5, 4096, %s50_s28, [#allocation5], %s659_s1, %s659_s1, %s660_s27  }
  0x33   :  { %650 = dma.done.wait [#allocation3], 512  }
  0x34   :  { %651 = vsyncadd [#allocation3], 4294966784 }
  0x35   :  { %652 = dma.done.wait [#allocation5], 12288  }
  0x36   :  { %653 = vsyncadd [#allocation5], 4294955008  ;;  %v661_v0 = vmov 0.0   ;;  %v69_v1 = vld [vmem:[#allocation2 + $0x8] sm:$0xff]  ;;  %v71_v2 = vld [vmem:[#allocation2 + $0x18] sm:$0xff]  ;;  %vm84_vm0 = vcmask 130048  }
  0x37   :  { %152 = vmatprep.mubr.f32.mxu0 %v661_v0  ;;  %v68_v3 = vld [vmem:[#allocation2] sm:$0xff]  ;;  %v472_v4 = vpack.c.bf16 %v71_v2, %v69_v1  ;;  %v70_v5 = vld [vmem:[#allocation2 + $0x10] sm:$0xff]  ;;  %v162_v6 = vld [vmem:[#allocation4 + $0x8] sm:$0xff] }
  0x38   :  { %v474_v7 = vpack.c.bf16 %v70_v5, %v68_v3  ;;  %v67_v8 = vld [vmem:[%s760_s0] sm:$0xff]  ;;  %v164_v9 = vld [vmem:[#allocation4 + $0x18] sm:$0xff]  ;;  %v163_v11 = vld [vmem:[#allocation4 + $0x10] sm:$0xff] }
  0x39   :  { %v161_v10 = vld [vmem:[#allocation4] sm:$0xff]  ;;  %473 = vmatprep.subr.bf16.mxu0 %v472_v4  ;;  %v476_v12 = vpack.c.bf16 %v164_v9, %v162_v6  ;;  %v166_v14 = vld [vmem:[#allocation4 + $0x28] sm:$0xff]  ;;  %v168_v15 = vld [vmem:[#allocation4 + $0x38] sm:$0xff] }
  0x3a   :  { %v478_v13 = vpack.c.bf16 %v163_v11, %v161_v10  ;;  %v165_v16 = vld [vmem:[#allocation4 + $0x20] sm:$0xff]  ;;  %475 = vmatpush1.bf16.msra.mxu0 %v474_v7  ;;  %v480_v17 = vpack.c.bf16 %v168_v15, %v166_v14  ;;  %v167_v18 = vld [vmem:[#allocation4 + $0x30] sm:$0xff]  ;;  %v170_v19 = vld [vmem:[#allocation4 + $0x48] sm:$0xff] }
  0x3b   :  { %v172_v20 = vld [vmem:[#allocation4 + $0x58] sm:$0xff]  ;;  %477 = vmatprep.subr.bf16.mxu1 %v476_v12  ;;  %v482_v21 = vpack.c.bf16 %v167_v18, %v165_v16  ;;  %v169_v23 = vld [vmem:[#allocation4 + $0x40] sm:$0xff]  ;;  %v171_v24 = vld [vmem:[#allocation4 + $0x50] sm:$0xff] }
  0x3c   :  { %479 = vmatpush1.bf16.msra.mxu1 %v478_v13  ;;  %v484_v22 = vpack.c.bf16 %v172_v20, %v170_v19  ;;  %v174_v25 = vld [vmem:[#allocation4 + $0x68] sm:$0xff]  ;;  %v176_v26 = vld [vmem:[#allocation4 + $0x78] sm:$0xff]  ;;  %v486_v27 = vpack.c.bf16 %v171_v24, %v169_v23  ;;  %v173_v29 = vld [vmem:[#allocation4 + $0x60] sm:$0xff] }
  0x3d   :  { %435 = vmatmul.mubr.msk.f32.vlgmr.msra.gmra.mrb[0].mxu0 %vm84_vm0, %v67_v8  ;;  %481 = vmatprep.subr.bf16.mxu1 %v480_v17  ;;  %v488_v28 = vpack.c.bf16 %v176_v26, %v174_v25  ;;  %v175_v30 = vld [vmem:[#allocation4 + $0x70] sm:$0xff]  ;;  %v178_v31 = vld [vmem:[#allocation4 + $0x88] sm:$0xff]  ;;  %v180_v32 = vld [vmem:[#allocation4 + $0x98] sm:$0xff] }
  0x3e   :  { %v490_v33 = vpack.c.bf16 %v175_v30, %v173_v29  ;;  %v492_v34 = vpack.c.bf16 %v180_v32, %v178_v31  ;;  %v177_v35 = vld [vmem:[#allocation4 + $0x80] sm:$0xff]  ;;  %v179_v36 = vld [vmem:[#allocation4 + $0x90] sm:$0xff]  ;;  %v182_v37 = vld [vmem:[#allocation4 + $0xa8] sm:$0xff] }
  0x3f   :  { %v184_v38 = vld [vmem:[#allocation4 + $0xb8] sm:$0xff]  ;;  %v494_v39 = vpack.c.bf16 %v179_v36, %v177_v35  ;;  %v181_v41 = vld [vmem:[#allocation4 + $0xa0] sm:$0xff]  ;;  %v183_v42 = vld [vmem:[#allocation4 + $0xb0] sm:$0xff] }
  0x40   :  { %483 = vmatpush1.bf16.msra.mxu1 %v482_v21  ;;  %v496_v40 = vpack.c.bf16 %v184_v38, %v182_v37  ;;  %v186_v43 = vld [vmem:[#allocation4 + $0xc8] sm:$0xff]  ;;  %v188_v44 = vld [vmem:[#allocation4 + $0xd8] sm:$0xff]  ;;  %v498_v45 = vpack.c.bf16 %v183_v42, %v181_v41  ;;  %v185_v47 = vld [vmem:[#allocation4 + $0xc0] sm:$0xff] }
  0x41   :  { %485 = vmatprep.subr.bf16.mxu1 %v484_v22  ;;  %v500_v46 = vpack.c.bf16 %v188_v44, %v186_v43  ;;  %v187_v48 = vld [vmem:[#allocation4 + $0xd0] sm:$0xff]  ;;  %v190_v49 = vld [vmem:[#allocation4 + $0xe8] sm:$0xff]  ;;  %v192_v50 = vld [vmem:[#allocation4 + $0xf8] sm:$0xff] }
  0x42   :  { %v502_v51 = vpack.c.bf16 %v187_v48, %v185_v47  ;;  %v504_v52 = vpack.c.bf16 %v192_v50, %v190_v49  ;;  %v189_v53 = vld [vmem:[#allocation4 + $0xe0] sm:$0xff]  ;;  %v191_v54 = vld [vmem:[#allocation4 + $0xf0] sm:$0xff]  ;;  %v194_v55 = vld [vmem:[#allocation4 + $0x108] sm:$0xff] }
  0x43   :  { %v196_v56 = vld [vmem:[#allocation4 + $0x118] sm:$0xff]  ;;  %v506_v57 = vpack.c.bf16 %v191_v54, %v189_v53  ;;  %v193_v59 = vld [vmem:[#allocation4 + $0x100] sm:$0xff]  ;;  %v195_v60 = vld [vmem:[#allocation4 + $0x110] sm:$0xff] }
  0x44   :  { %487 = vmatpush1.bf16.msra.mxu1 %v486_v27  ;;  %v508_v58 = vpack.c.bf16 %v196_v56, %v194_v55  ;;  %v198_v61 = vld [vmem:[#allocation4 + $0x128] sm:$0xff]  ;;  %v200_v62 = vld [vmem:[#allocation4 + $0x138] sm:$0xff]  ;;  %v510_v63 = vpack.c.bf16 %v195_v60, %v193_v59  ;;  %v197_v1 = vld [vmem:[#allocation4 + $0x120] sm:$0xff] }
  0x45   :  { %489 = vmatprep.subr.bf16.mxu1 %v488_v28  ;;  %v512_v0 = vpack.c.bf16 %v200_v62, %v198_v61  ;;  %v199_v2 = vld [vmem:[#allocation4 + $0x130] sm:$0xff]  ;;  %v202_v3 = vld [vmem:[#allocation4 + $0x148] sm:$0xff]  ;;  %v204_v4 = vld [vmem:[#allocation4 + $0x158] sm:$0xff] }
  0x46   :  { %v514_v5 = vpack.c.bf16 %v199_v2, %v197_v1  ;;  %v516_v6 = vpack.c.bf16 %v204_v4, %v202_v3  ;;  %v201_v7 = vld [vmem:[#allocation4 + $0x140] sm:$0xff]  ;;  %v203_v8 = vld [vmem:[#allocation4 + $0x150] sm:$0xff]  ;;  %v206_v9 = vld [vmem:[#allocation4 + $0x168] sm:$0xff] }
  0x47   :  { %v208_v10 = vld [vmem:[#allocation4 + $0x178] sm:$0xff]  ;;  %v518_v11 = vpack.c.bf16 %v203_v8, %v201_v7  ;;  %v205_v13 = vld [vmem:[#allocation4 + $0x160] sm:$0xff]  ;;  %v207_v14 = vld [vmem:[#allocation4 + $0x170] sm:$0xff] }
  0x48   :  { %491 = vmatpush1.bf16.msra.mxu1 %v490_v33  ;;  %v520_v12 = vpack.c.bf16 %v208_v10, %v206_v9  ;;  %v210_v15 = vld [vmem:[#allocation4 + $0x188] sm:$0xff]  ;;  %v212_v16 = vld [vmem:[#allocation4 + $0x198] sm:$0xff]  ;;  %v522_v17 = vpack.c.bf16 %v207_v14, %v205_v13  ;;  %v209_v19 = vld [vmem:[#allocation4 + $0x180] sm:$0xff] }
  0x49   :  { %493 = vmatprep.subr.bf16.mxu1 %v492_v34  ;;  %v524_v18 = vpack.c.bf16 %v212_v16, %v210_v15  ;;  %v211_v20 = vld [vmem:[#allocation4 + $0x190] sm:$0xff]  ;;  %v214_v21 = vld [vmem:[#allocation4 + $0x1a8] sm:$0xff]  ;;  %v216_v22 = vld [vmem:[#allocation4 + $0x1b8] sm:$0xff]  ;;  %v74_v15 = vlaneseq }
  0x4a   :  { %v526_v23 = vpack.c.bf16 %v211_v20, %v209_v19  ;;  %v528_v24 = vpack.c.bf16 %v216_v22, %v214_v21  ;;  %v213_v25 = vld [vmem:[#allocation4 + $0x1a0] sm:$0xff]  ;;  %v215_v26 = vld [vmem:[#allocation4 + $0x1b0] sm:$0xff]  ;;  %v218_v27 = vld [vmem:[#allocation4 + $0x1c8] sm:$0xff] }
  0x4b   :  { %v220_v28 = vld [vmem:[#allocation4 + $0x1d8] sm:$0xff]  ;;  %v530_v29 = vpack.c.bf16 %v215_v26, %v213_v25  ;;  %v217_v31 = vld [vmem:[#allocation4 + $0x1c0] sm:$0xff]  ;;  %v219_v32 = vld [vmem:[#allocation4 + $0x1d0] sm:$0xff]  ;;  %v75_v16 = vshrl.u32 %v74_v15, 7 }
  0x4c   :  { %495 = vmatpush1.bf16.msra.mxu1 %v494_v39  ;;  %v532_v30 = vpack.c.bf16 %v220_v28, %v218_v27  ;;  %v534_v33 = vpack.c.bf16 %v219_v32, %v217_v31  ;;  %v222_v34 = vld [vmem:[#allocation4 + $0x1e8] sm:$0xff]  ;;  %v224_v35 = vld [vmem:[#allocation4 + $0x1f8] sm:$0xff]  ;;  %v221_v37 = vld [vmem:[#allocation4 + $0x1e0] sm:$0xff] }
  0x4d   :  { %497 = vmatprep.subr.bf16.mxu1 %v496_v40  ;;  %v536_v36 = vpack.c.bf16 %v224_v35, %v222_v34  ;;  %v223_v38 = vld [vmem:[#allocation4 + $0x1f0] sm:$0xff]  ;;  %v326_v40 = vld [vmem:[#allocation6 + $0x80] sm:$0xff]  ;;  %v327_v41 = vld [vmem:[#allocation6 + $0x88] sm:$0xff]  ;;  %v80_v19 = vsub.s32 1, %v75_v16 }
  0x4e   :  { %v538_v39 = vpack.c.bf16 %v223_v38, %v221_v37  ;;  %v310_v42 = vld [vmem:[#allocation6] sm:$0xff]  ;;  %v540_v43 = vpack.c.bf16 %v327_v41, %v326_v40  ;;  %v311_v44 = vld [vmem:[#allocation6 + $0x8] sm:$0xff]  ;;  %v312_v49 = vld [vmem:[#allocation6 + $0x10] sm:$0xff] }
  0x4f   :  { %v542_v47 = vpack.c.bf16 %v311_v44, %v310_v42  ;;  %v313_v50 = vld [vmem:[#allocation6 + $0x18] sm:$0xff]  ;;  %v314_v55 = vld [vmem:[#allocation6 + $0x20] sm:$0xff]  ;;  %v315_v56 = vld [vmem:[#allocation6 + $0x28] sm:$0xff] }
  0x50   :  { %499 = vmatpush1.bf16.msra.mxu1 %v498_v45  ;;  %v328_v45 = vld [vmem:[#allocation6 + $0x90] sm:$0xff]  ;;  %541 = vmatprep.subr.bf16.mxu0 %v540_v43  ;;  %v546_v53 = vpack.c.bf16 %v313_v50, %v312_v49  ;;  %v550_v59 = vpack.c.bf16 %v315_v56, %v314_v55  ;;  %v317_v62 = vld [vmem:[#allocation6 + $0x38] sm:$0xff]  ;;  %v318_v3 = vld [vmem:[#allocation6 + $0x40] sm:$0xff] }
  0x51   :  { %501 = vmatprep.subr.bf16.mxu1 %v500_v46  ;;  %v329_v46 = vld [vmem:[#allocation6 + $0x98] sm:$0xff]  ;;  %543 = vmatpush3.bf16.msra.mxu0 %v542_v47  ;;  %v316_v61 = vld [vmem:[#allocation6 + $0x30] sm:$0xff]  ;;  %v319_v4 = vld [vmem:[#allocation6 + $0x48] sm:$0xff] }
  0x52   :  { %v544_v48 = vpack.c.bf16 %v329_v46, %v328_v45  ;;  %v554_v1 = vpack.c.bf16 %v317_v62, %v316_v61  ;;  %v558_v7 = vpack.c.bf16 %v319_v4, %v318_v3  ;;  %v320_v9 = vld [vmem:[#allocation6 + $0x50] sm:$0xff]  ;;  %v321_v10 = vld [vmem:[#allocation6 + $0x58] sm:$0xff]  ;;  %v322_v28 = vld [vmem:[#allocation6 + $0x60] sm:$0xff] }
  0x53   :  { %v562_v13 = vpack.c.bf16 %v321_v10, %v320_v9  ;;  %v340_v31 = vld [vmem:[#allocation6 + $0xf0] sm:$0xff]  ;;  %v341_v32 = vld [vmem:[#allocation6 + $0xf8] sm:$0xff]  ;;  %v225_v37 = vld [vmem:[%s764_s4] sm:$0x3] }
  0x54   :  { %503 = vmatpush1.bf16.msra.mxu1 %v502_v51  ;;  %v330_v51 = vld [vmem:[#allocation6 + $0xa0] sm:$0xff]  ;;  %545 = vmatprep.subr.bf16.mxu0 %v544_v48  ;;  %v324_v34 = vld [vmem:[#allocation6 + $0x70] sm:$0xff]  ;;  %v325_v35 = vld [vmem:[#allocation6 + $0x78] sm:$0xff] }
  0x55   :  { %505 = vmatprep.subr.bf16.mxu1 %v504_v52  ;;  %v331_v52 = vld [vmem:[#allocation6 + $0xa8] sm:$0xff]  ;;  %547 = vmatpush3.bf16.msra.mxu0 %v546_v53  ;;  %v436_v48 = vld [vmem:[%s766_s6] ss:$0 sm:$0xff] }
  0x56   :  { %v548_v54 = vpack.c.bf16 %v331_v52, %v330_v51 }
  0x58   :  { %507 = vmatpush1.bf16.msra.mxu1 %v506_v57  ;;  %v332_v57 = vld [vmem:[#allocation6 + $0xb0] sm:$0xff]  ;;  %549 = vmatprep.subr.bf16.mxu0 %v548_v54 }
  0x59   :  { %509 = vmatprep.subr.bf16.mxu1 %v508_v58  ;;  %v333_v58 = vld [vmem:[#allocation6 + $0xb8] sm:$0xff]  ;;  %551 = vmatpush3.bf16.msra.mxu0 %v550_v59 }
  0x5a   :  { %v552_v60 = vpack.c.bf16 %v333_v58, %v332_v57 }
  0x5c   :  { %511 = vmatpush1.bf16.msra.mxu1 %v510_v63  ;;  %v334_v63 = vld [vmem:[#allocation6 + $0xc0] sm:$0xff]  ;;  %553 = vmatprep.subr.bf16.mxu0 %v552_v60 }
  0x5d   :  { %513 = vmatprep.subr.bf16.mxu1 %v512_v0  ;;  %v335_v0 = vld [vmem:[#allocation6 + $0xc8] sm:$0xff]  ;;  %555 = vmatpush3.bf16.msra.mxu0 %v554_v1 }
  0x5e   :  { %v556_v2 = vpack.c.bf16 %v335_v0, %v334_v63 }
  0x60   :  { %515 = vmatpush1.bf16.msra.mxu1 %v514_v5  ;;  %v336_v5 = vld [vmem:[#allocation6 + $0xd0] sm:$0xff]  ;;  %557 = vmatprep.subr.bf16.mxu0 %v556_v2 }
  0x61   :  { %517 = vmatprep.subr.bf16.mxu1 %v516_v6  ;;  %v337_v6 = vld [vmem:[#allocation6 + $0xd8] sm:$0xff]  ;;  %559 = vmatpush3.bf16.msra.mxu0 %v558_v7 }
  0x62   :  { %v560_v8 = vpack.c.bf16 %v337_v6, %v336_v5 }
  0x64   :  { %519 = vmatpush1.bf16.msra.mxu1 %v518_v11  ;;  %v338_v11 = vld [vmem:[#allocation6 + $0xe0] sm:$0xff]  ;;  %561 = vmatprep.subr.bf16.mxu0 %v560_v8 }
  0x65   :  { %521 = vmatprep.subr.bf16.mxu1 %v520_v12  ;;  %v339_v12 = vld [vmem:[#allocation6 + $0xe8] sm:$0xff]  ;;  %563 = vmatpush3.bf16.msra.mxu0 %v562_v13 }
  0x66   :  { %v564_v14 = vpack.c.bf16 %v339_v12, %v338_v11 }
  0x68   :  { %523 = vmatpush1.bf16.msra.mxu1 %v522_v17  ;;  %565 = vmatprep.subr.bf16.mxu0 %v564_v14  ;;  %v76_v17 = vsub.s32 0, %v75_v16 }
  0x69   :  { %525 = vmatprep.subr.bf16.mxu1 %v524_v18  ;;  %v72_v18 = vld [vmem:[%s762_s2] sm:$0x3] }
  0x6a   :  { %v77_v20 = vrot.slane %v72_v18, %v76_v17  ;;  %v81_v21 = vrot.slane %v72_v18, %v80_v19  ;;  %v230_v38 = vrot.slane %v225_v37, %v76_v17 }
  0x6c   :  { %527 = vmatpush1.bf16.msra.mxu1 %v526_v23 }
  0x6d   :  { %529 = vmatprep.subr.bf16.mxu1 %v528_v24 }
  0x70   :  { %531 = vmatpush1.bf16.msra.mxu1 %v530_v29  ;;  %v323_v29 = vld [vmem:[#allocation6 + $0x68] sm:$0xff] }
  0x71   :  { %533 = vmatprep.subr.bf16.mxu1 %v532_v30  ;;  %v566_v30 = vpack.c.bf16 %v323_v29, %v322_v28 }
  0x73   :  { %567 = vmatpush3.bf16.msra.mxu0 %v566_v30 }
  0x74   :  { %535 = vmatpush1.bf16.msra.mxu1 %v534_v33  ;;  %v568_v33 = vpack.c.bf16 %v341_v32, %v340_v31 }
  0x75   :  { %537 = vmatprep.subr.bf16.mxu1 %v536_v36  ;;  %v570_v36 = vpack.c.bf16 %v325_v35, %v324_v34 }
  0x76   :  { %569 = vmatprep.subr.bf16.mxu0 %v568_v33 }
  0x77   :  { %571 = vmatpush3.bf16.msra.mxu0 %v570_v36 }
  0x78   :  { %539 = vmatpush1.bf16.msra.mxu1 %v538_v39  ;;  %v234_v39 = vrot.slane %v225_v37, %v80_v19 }
 0x110   :  { %v154_v22 = vpop.f32.mrb[0].mxu0 }
 0x111   :  { %v155_v23 = vadd.f32 %v154_v22, %v77_v20  ;;  %v156_v24 = vpop.f32.mrb[1].mxu0 }
 0x112   :  { %v157_v25 = vadd.f32 %v156_v24, %v81_v21 }
 0x113   :  { %v159_v27 = vmax.f32 %v155_v23, 0.0 }
 0x114   :  { %v160_v26 = vmax.f32 %v157_v25, 0.0 }
 0x116   :  { %301 = vmatprep.mubr.f32.mxu1 %v160_v26 }
 0x117   :  { %302 = vmatmul.mubr.f32.vlgmr.msra.gmra.mrb[0].mxu1 %v159_v27 }
 0x1ea   :  { %v303_v40 = vpop.f32.mrb[0].mxu1 }
 0x1eb   :  { %v304_v41 = vadd.f32 %v303_v40, %v230_v38  ;;  %v305_v42 = vpop.f32.mrb[1].mxu1 }
 0x1ec   :  { %v306_v43 = vadd.f32 %v305_v42, %v234_v39 }
 0x1ed   :  { %v308_v45 = vmax.f32 %v304_v41, 0.0 }
 0x1ee   :  { %v309_v44 = vmax.f32 %v306_v43, 0.0 }
 0x1f0   :  { %413 = vmatprep.mubr.f32.mxu0 %v309_v44 }
 0x1f1   :  { %414 = vmatmul.mubr.f32.vlgmr.msra.gmra.mrb[2].mxu0 %v308_v45 }
 0x2c4   :  { %v469_v46 = vpop.f32.mrb[2].mxu0 }
 0x2c5   :  { %v470_v47 = vpop.f32.mrb[3].mxu0 }
 0x2c6   :  { %v471_v49 = vadd.f32 %v470_v47, %v469_v46 }
 0x2c8   :  { %v416_v50 = vadd.f32 %v471_v49, %v436_v48 }
 0x2ca   :  { %419 = vmax.xlane.f32.xlu0 %v416_v50 }
 0x357   :  { %v420_v51 = vpop.xlane.xlu0 %419 }
 0x358   :  { %v421_v52 = vsub.f32 %v416_v50, %v420_v51 }
 0x35a   :  { %v422_v53 = vmul.f32 1.442695, %v421_v52 }
 0x35c   :  { %580 = vpow2.f32 %v422_v53 }
 0x366   :  { %v581_v54 = vpop.eup %580 }
 0x367   :  { %424 = vadd.xlane.f32.xlu0 %v581_v54 }
 0x3f4   :  { %v425_v55 = vpop.xlane.xlu0 %424 }
 0x3f5   :  { %582 = vrcp.f32 %v425_v55 }
 0x3ff   :  { %v583_v56 = vpop.eup %582 }
 0x400   :  { %v427_v57 = vmul.f32 %v583_v56, %v581_v54 }
 0x402   :  { %428 = vst [vmem:[%s767_s7] sm:$0xff] %v427_v57 }
 0x403   :  { %433 = vsyncpa [#allocation3], 1 }
 0x404   :  { %434 = vsyncpa [#allocation5], 1 }

</bundles_post_ra>
